<compile_context>
chip_gen: v6e
topology: v6e:2x2x1
jax: 0.10.0
libtpu: 0.0.40
codegen_flags: <defaults>
</compile_context>

<pallas_src>
import jax
import jax.numpy as jnp
from jax.experimental import pallas as pl
from jax.experimental.pallas import tpu as pltpu

_SMALL_BYTES = 1 << 20                 # <= 1 MiB: single ungridded block
_COLS_CANDIDATES = (32768, 16384, 8192, 4096, 2048, 1024, 512, 256, 128)


def _swish_kernel(beta_ref, x_ref, o_ref):
    # beta_ref: (1,) f32 in SMEM; x_ref / o_ref: lane-dense VMEM tiles.
    beta = beta_ref[0]
    x = x_ref[...].astype(jnp.float32)
    o_ref[...] = (x * jax.nn.sigmoid(beta * x)).astype(o_ref.dtype)


def _sublane_multiple(dtype) -> int:
    # Minimum sublane granularity so packed sub-32-bit rows stay whole.
    return {4: 8, 2: 16, 1: 32}.get(jnp.dtype(dtype).itemsize, 8)


def _chip_profile():
    """Returns (tile_target_bytes, min_grid_steps) for the local TPU generation."""
    try:
        kind = jax.devices()[0].device_kind.lower()
    except Exception:
        return 4 << 20, 1
    if "v7" in kind or "7x" in kind:
        return 8 << 20, 4      # 3.2 TB/s HBM; 2 TCs share the parallel grid
    if "v6" in kind:
        return 4 << 20, 1
    return 2 << 20, 1          # v5e and older: per-step overhead already <8%


def _choose_layout(n: int):
    """Pick (pad, rows, cols): widest lane-dense cols that divides n."""
    for cols in _COLS_CANDIDATES:
        if n % cols == 0:
            return 0, n // cols, cols
    # TODO(synk): a truly ragged element count still takes a pad + slice copy
    # (~2-3x HBM traffic); a manual-DMA tail kernel would remove it, but ragged
    # activation sizes are rare in practice.
    cols = 1024
    pad = (-n) % cols
    return pad, (n + pad) // cols, cols


def _round_down(v: int, m: int) -> int:
    return max(m, (v // m) * m)


def _round_up(v: int, m: int) -> int:
    return -(-v // m) * m


def swish(x: jax.Array, beta) -> jax.Array:
    """Elementwise Swish: x * sigmoid(beta * x). Preserves shape & dtype."""
    orig_shape = x.shape
    orig_dtype = x.dtype
    n = x.size
    itemsize = jnp.dtype(orig_dtype).itemsize
    sub = _sublane_multiple(orig_dtype)

    pad, rows, cols = _choose_layout(n)
    x_flat = x.reshape(-1)
    if pad:
        x_flat = jnp.pad(x_flat, (0, pad))   # swish(0) == 0, tail sliced off below
    x2d = x_flat.reshape(rows, cols)

    beta_smem = jnp.asarray(beta, dtype=jnp.float32).reshape(1)
    out_shape = jax.ShapeDtypeStruct((rows, cols), orig_dtype)
    smem_spec = pl.BlockSpec(memory_space=pltpu.MemorySpace.SMEM)

    total_bytes = rows * cols * itemsize
    if total_bytes <= _SMALL_BYTES:
        # Single ungridded invocation: whole slab resident in VMEM.
        out2d = pl.pallas_call(
            _swish_kernel,
            out_shape=out_shape,
            in_specs=[smem_spec,
                      pl.BlockSpec(memory_space=pltpu.MemorySpace.VMEM)],
            out_specs=pl.BlockSpec(memory_space=pltpu.MemorySpace.VMEM),
        )(beta_smem, x2d)
    else:
        # Gridded path: generation-sized lane-dense row tiles, cdiv grid, and a
        # masked partial trailing block (handled by Pallas boundary semantics).
        tile_target, min_grid = _chip_profile()
        row_bytes = cols * itemsize
        tile_rows = _round_down(tile_target // row_bytes, sub)
        if min_grid > 1:
            # Keep the parallel grid >= min_grid steps so both v7x TCs get work,
            # but never shrink tiles below ~0.5 MiB.
            floor_rows = _round_down((512 * 1024) // row_bytes, sub)
            balanced_rows = _round_down(rows // min_grid, sub)
            tile_rows = min(tile_rows, max(balanced_rows, floor_rows))
        tile_rows = max(sub, min(tile_rows, _round_up(rows, sub)))

        grid_len = pl.cdiv(rows, tile_rows)
        tile_bytes = tile_rows * row_bytes
        # 2 buffers x (in + out) x tile, plus headroom (<= ~40 MiB on v7x).
        vmem_limit = 4 * tile_bytes + (8 << 20)

        out2d = pl.pallas_call(
            _swish_kernel,
            out_shape=out_shape,
            grid=(grid_len,),
            in_specs=[smem_spec,
                      pl.BlockSpec((tile_rows, cols), lambda i: (i, 0))],
            out_specs=pl.BlockSpec((tile_rows, cols), lambda i: (i, 0)),
            compiler_params=pltpu.CompilerParams(
                dimension_semantics=("parallel",),
                vmem_limit_bytes=vmem_limit,
            ),
        )(beta_smem, x2d)

    out_flat = out2d.reshape(-1)
    if pad:
        out_flat = out_flat[:n]
    return out_flat.reshape(orig_shape)


if __name__ == "__main__":
    k_small, k_med = jax.random.split(jax.random.PRNGKey(0))

    # Matches nn.Parameter(torch.tensor(1.0))
    beta = jnp.float32(1.0)

    # Small 4-D activation (the module's typical input) -> ungridded path.
    x_small = jax.random.normal(k_small, (2, 4, 16, 16), dtype=jnp.float32)
    y_small = jax.block_until_ready(swish(x_small, beta))
    ref_small = x_small * jax.nn.sigmoid(beta * x_small)
    assert y_small.shape == x_small.shape and y_small.dtype == x_small.dtype
    assert jnp.allclose(y_small, ref_small, atol=1e-5, rtol=1e-5)

    # Medium input -> gridded path, including a partial trailing block
    # (rows = 65 with 16-row tiles), to validate the cdiv/masked boundary.
    x_med = jax.random.normal(k_med, (520, 1024), dtype=jnp.float32)
    y_med = jax.block_until_ready(swish(x_med, beta))
    ref_med = x_med * jax.nn.sigmoid(beta * x_med)
    assert y_med.shape == x_med.shape and y_med.dtype == x_med.dtype
    assert jnp.allclose(y_med, ref_med, atol=1e-5, rtol=1e-5)

    print("KERNEL_OK")
</pallas_src>

<mosaic_0001>
module attributes {stable_mosaic.version = 11 : i64} {
  func.func @_swish_kernel(%arg0: memref<1xf32, #tpu.memory_space<smem>>, %arg1: memref<1x2048xf32, #tpu.memory_space<vmem>>, %arg2: memref<1x2048xf32, #tpu.memory_space<vmem>>) attributes {dimension_semantics = [], scalar_prefetch = 0 : i64, scratch_operands = 0 : i64, tpu.core_type = #tpu.core_type<tc>} {
    %c0 = arith.constant 0 : index
    %0 = memref.load %arg0[%c0] : memref<1xf32, #tpu.memory_space<smem>>
    %c0_0 = arith.constant 0 : index
    %c0_1 = arith.constant 0 : index
    %1 = vector.load %arg1[%c0_0, %c0_1] : memref<1x2048xf32, #tpu.memory_space<vmem>>, vector<1x2048xf32>
    %2 = vector.broadcast %0 : f32 to vector<1x2048xf32>
    %3 = arith.mulf %2, %1 : vector<1x2048xf32>
    %4 = arith.negf %3 : vector<1x2048xf32>
    %5 = math.exp %4 : vector<1x2048xf32>
    %cst = arith.constant 1.000000e+00 : f32
    %6 = vector.broadcast %cst : f32 to vector<1x2048xf32>
    %7 = arith.addf %6, %5 : vector<1x2048xf32>
    %8 = arith.divf %6, %7 : vector<1x2048xf32>
    %9 = arith.mulf %1, %8 : vector<1x2048xf32>
    %c0_2 = arith.constant 0 : index
    %c0_3 = arith.constant 0 : index
    %10 = vector.load %arg2[%c0_2, %c0_3] : memref<1x2048xf32, #tpu.memory_space<vmem>>, vector<1x2048xf32>
    tpu.vector_store %arg2[%c0_2, %c0_3], %9 {strides = array<i32>} : memref<1x2048xf32, #tpu.memory_space<vmem>>, vector<1x2048xf32>,
    return
  }
}

</mosaic_0001>

<bundles_post_ra>
// kernel: tpu_custom_call.1
= control target key start
LH: loop header
LB: loop body
LE: loop exit
PB: predicated region body
PF: predicated region fallthrough
CT: control target
= control target key end

     0   :  { %8 = vsyncpa [#allocation4], 0  ;;  %s144_s0 = inlined_call_operand.<no memory space> [shape: f32[1], index: 0, kind: input, shape index: {}]   ;;  %s145_s1 = inlined_call_operand.hbm [shape: f32[1,2048], index: 1, kind: input, shape index: {}]   ;;  %s146_s2 = inlined_call_operand.hbm [shape: f32[1,2048], index: 2, kind: output, shape index: {}]  }
   0x1   :  { %9 = vsyncpa [#allocation5], 0  ;;  %s118_s9 = smov [#allocation3]  }
   0x2   :  { %s18_s10 = sshll.u32 %s118_s9, 4  ;;  %s19_s10 = int_to_ptr.vmem [resolvable:$true] %s18_s10 }
   0x3   :  { %s82_s11 = scalar_lea.vmem %s19_s10, 256  ;;  %p87_p1 = scmp.lt.s32.totalorder %s19_s10, %s19_s10 }
   0x4   :  { %p83_p0 = scmp.ne.s32.totalorder %s19_s10, %s82_s11  ;;  %p88_p2 = scmp.lt.s32.totalorder %s82_s11, %s82_s11 }
   0x6   :  { %p89_p3 = por %p88_p2, %p87_p1 }
   0x8   :  { %p90_p4 = pnand %p89_p3, %p83_p0 }
   0xa   :  { %93 = shalt.err (!%p90_p4)
}
   0xb   :  { %21 = dma.hbm_to_vmem [thread:$0]  %s145_s1, 256, %s19_s10, [#allocation4]  }
   0xc   :  { %114 = dma.done.wait [#allocation4], 256  }
   0xd   :  { %115 = vsyncadd [#allocation4], 4294967040  ;;  %v28_v0 = vstv %s144_s0  ;;  %v26_v1 = vld [vmem:[#allocation3] sm:$0xff]  ;;  %v27_v2 = vld [vmem:[#allocation3 + $0x8] sm:$0xff]  ;;  %s119_s1 = smov [#allocation6]  }
   0xe   :  { %v29_v3 = vmul.f32 %v28_v0, %v26_v1  ;;  %v30_v4 = vmul.f32 %v28_v0, %v27_v2  ;;  %s53_s16 = sshll.u32 %s119_s1, 4  ;;  %s54_s16 = int_to_ptr.vmem [resolvable:$true] %s53_s16 }
   0xf   :  { %s94_s0 = scalar_lea.vmem %s54_s16, 256  ;;  %p99_p6 = scmp.lt.s32.totalorder %s54_s16, %s54_s16 }
  0x10   :  { %v62_v5 = vmul.f32 -1.442695, %v29_v3  ;;  %v63_v6 = vmul.f32 -1.442695, %v30_v4  ;;  %p95_p5 = scmp.ne.s32.totalorder %s54_s16, %s94_s0  ;;  %p100_p7 = scmp.lt.s32.totalorder %s94_s0, %s94_s0 }
  0x12   :  { %66 = vpow2.f32 %v62_v5  ;;  %p101_p8 = por %p100_p7, %p99_p6 }
  0x13   :  { %68 = vpow2.f32 %v63_v6 }
  0x14   :  { %p102_p9 = pnand %p101_p8, %p95_p5 }
  0x1f   :  { %v67_v7 = vpop.eup %66 }
  0x20   :  { %v69_v8 = vpop.eup %68  ;;  %v37_v9 = vadd.f32 1.0, %v67_v7 }
  0x21   :  { %v38_v10 = vadd.f32 1.0, %v69_v8 }
  0x22   :  { %70 = vrcp.f32 %v37_v9 }
  0x23   :  { %72 = vrcp.f32 %v38_v10 }
  0x2f   :  { %v71_v11 = vpop.eup %70 }
  0x30   :  { %v73_v12 = vpop.eup %72  ;;  %v43_v13 = vmul.f32 %v71_v11, %v26_v1 }
  0x31   :  { %v44_v14 = vmul.f32 %v73_v12, %v27_v2 }
  0x32   :  { %45 = vst [vmem:[#allocation6] sm:$0xff] %v43_v13 }
  0x33   :  { %46 = vst [vmem:[#allocation6 + $0x8] sm:$0xff] %v44_v14 }
  0x34   :  { %105 = shalt.err (!%p102_p9)
}
  0x35   :  { %56 = dma.vmem_to_hbm [thread:$0]  %s54_s16, 256, %s146_s2, [#allocation5]  }
  0x36   :  { %116 = dma.done.wait [#allocation5], 256  }
  0x37   :  { %117 = vsyncadd [#allocation5], 4294967040 }
  0x38   :  { %60 = vsyncpa [#allocation4], 1 }
  0x39   :  { %61 = vsyncpa [#allocation5], 1 }

</bundles_post_ra>
